<compile_context>
chip_gen: v7x
topology: tpu7x:2x2x1
jax: 0.10.0
libtpu: 0.0.40
codegen_flags: <defaults>
</compile_context>

<pallas_src>
import jax
import jax.numpy as jnp
from jax import lax
from jax.experimental import pallas as pl
from jax.experimental.pallas import tpu as pltpu


_UNROLL_T_MAX = 32  # fully unroll the serial time loop below this many steps


def _make_kernel(num_layers, batch, seq_len):
    L, B, T = num_layers, batch, seq_len

    def kernel(mask_ref, x_ref, *rest):
        # rest = (wx_0 .. wx_{L-1}, wh, b, out_ref, act_ref)
        wx_refs = rest[:L]
        wh_ref = rest[L]           # (L, H, H)
        b_ref = rest[L + 1]        # (L, 1, H)
        out_ref = rest[L + 2]      # (T*B, H)  time-major rows
        act_ref = rest[L + 3]      # VMEM scratch (T*B, H), reused per layer

        for l in range(L):
            # ---- input projection for ALL timesteps: one big MXU matmul ----
            src = x_ref if l == 0 else act_ref
            proj = (
                jnp.dot(src[...], wx_refs[l][...],
                        preferred_element_type=jnp.float32)
                + b_ref[l]                         # (1, H) broadcasts over rows
            )
            act_ref[...] = proj                    # row t*B+b holds proj_{t,b}

            wh_l = wh_ref[l]                       # (H, H) hoisted out of the loop
            h_dim = wh_l.shape[-1]

            def step_at(row, h_prev, wh_l=wh_l):
                p = act_ref[pl.ds(row, B), :]                       # (B, H)
                h_new = jnp.maximum(
                    p + jnp.dot(h_prev, wh_l,
                                preferred_element_type=jnp.float32),
                    0.0)
                act_ref[pl.ds(row, B), :] = h_new                   # feeds next layer
                return h_new

            h = jnp.zeros((B, h_dim), jnp.float32)
            if T <= _UNROLL_T_MAX:
                # static unroll: static sublane slices, h stays in vregs
                for t in range(T):
                    h = step_at(t * B, h)
            else:
                def body(t, h_prev):
                    return step_at(pl.multiple_of(t * B, B), h_prev)
                h = lax.fori_loop(0, T, body, h)

        # pad_packed_sequence semantics: zero positions with t >= lengths[b].
        out_ref[...] = jnp.where(mask_ref[...] > 0, act_ref[...], 0.0)

    return kernel


def rnn_forward(x, lengths, wx_list, wh, b):
    """x: (B, T, input_size) batch_first.  lengths: host ints (list / tuple).

    Returns (B, max(lengths), hidden) float32, matching
    pad_packed_sequence(self.rnn(pack_padded_sequence(...)), batch_first=True).
    """
    B, T, input_size = x.shape
    L, H, _ = wh.shape

    lengths_host = [int(v) for v in lengths]
    max_len = max(lengths_host)            # recurrence only runs to max(lengths)
    TB = max_len * B

    # Time-major flattening: row r = t*B + b (B contiguous rows per timestep).
    x_flat = (
        jnp.transpose(x[:, :max_len, :].astype(jnp.float32), (1, 0, 2))
        .reshape(TB, input_size)
    )

    # Precomputed validity mask per output row (t < lengths[b]).
    lengths_arr = jnp.asarray(lengths_host, jnp.int32)
    t_of_row = jnp.repeat(jnp.arange(max_len, dtype=jnp.int32), B)
    len_of_row = jnp.tile(lengths_arr, max_len)
    mask_rows = (t_of_row < len_of_row).astype(jnp.int32).reshape(TB, 1)

    kernel = _make_kernel(L, B, max_len)

    in_specs = [
        pl.BlockSpec((TB, 1), lambda i: (0, 0)),               # row mask
        pl.BlockSpec((TB, input_size), lambda i: (0, 0)),      # x rows
    ]
    for l in range(L):
        in_dim = input_size if l == 0 else H
        in_specs.append(pl.BlockSpec((in_dim, H), lambda i: (0, 0)))  # Wx_l
    in_specs.append(pl.BlockSpec((L, H, H), lambda i: (0, 0, 0)))     # Wh stack
    in_specs.append(pl.BlockSpec((L, 1, H), lambda i: (0, 0, 0)))     # b stack

    out_flat = pl.pallas_call(
        kernel,
        out_shape=jax.ShapeDtypeStruct((TB, H), jnp.float32),
        grid_spec=pltpu.PrefetchScalarGridSpec(
            num_scalar_prefetch=0,
            grid=(1,),                      # single invocation: no per-step overhead
            in_specs=in_specs,
            out_specs=pl.BlockSpec((TB, H), lambda i: (0, 0)),
            scratch_shapes=[pltpu.VMEM((TB, H), jnp.float32)],
        ),
        compiler_params=pltpu.CompilerParams(
            dimension_semantics=("arbitrary",),
        ),
    )(mask_rows, x_flat, *wx_list, wh, b)

    # (T*B, H) time-major rows -> (B, max_len, H) batch_first (cheap relayout).
    return jnp.transpose(out_flat.reshape(max_len, B, H), (1, 0, 2))


def rnn_reference(x, lengths, wx_list, wh, b):
    """Pure-JAX reference of the packed relu-RNN forward (mirrors kernel math)."""
    B, T, _ = x.shape
    L, H, _ = wh.shape
    hs = [jnp.zeros((B, H), jnp.float32) for _ in range(L)]
    lens = jnp.asarray([int(v) for v in lengths], jnp.int32)[:, None]
    max_len = max(int(v) for v in lengths)
    outs = []
    for t in range(max_len):
        inp = x[:, t, :].astype(jnp.float32)
        for l in range(L):
            proj = jnp.dot(inp, wx_list[l], precision=lax.Precision.HIGHEST) + b[l]
            pre = proj + jnp.dot(hs[l], wh[l], precision=lax.Precision.HIGHEST)
            hs[l] = jnp.maximum(pre, 0.0)
            inp = hs[l]
        outs.append(jnp.where(lens > t, inp, 0.0))
    return jnp.stack(outs, axis=1)


def init_params(key, input_size, hidden, num_layers, output_dim):
    """Deterministic init mimicking PyTorch's U(-1/sqrt(H), 1/sqrt(H))."""
    bound = 1.0 / jnp.sqrt(jnp.float32(hidden))
    keys = jax.random.split(key, 4 * num_layers + 2)
    wx_list, wh_rows, b_rows = [], [], []
    ki = 0
    for l in range(num_layers):
        in_dim = input_size if l == 0 else hidden
        w_ih = jax.random.uniform(keys[ki], (hidden, in_dim), jnp.float32, -bound, bound); ki += 1
        w_hh = jax.random.uniform(keys[ki], (hidden, hidden), jnp.float32, -bound, bound); ki += 1
        b_ih = jax.random.uniform(keys[ki], (hidden,), jnp.float32, -bound, bound); ki += 1
        b_hh = jax.random.uniform(keys[ki], (hidden,), jnp.float32, -bound, bound); ki += 1
        wx_list.append(w_ih.T)                    # (in_dim, H) for x @ Wx
        wh_rows.append(w_hh.T)                    # (H, H) for h @ Wh
        b_rows.append((b_ih + b_hh)[None, :])     # (1, H)
    wh = jnp.stack(wh_rows, axis=0)               # (L, H, H)
    b = jnp.stack(b_rows, axis=0)                 # (L, 1, H)
    # self.W (Linear h -> output_dim) exists on the module but is unused in forward().
    w_out = jax.random.uniform(keys[ki], (output_dim, hidden), jnp.float32, -bound, bound); ki += 1
    b_out = jax.random.uniform(keys[ki], (output_dim,), jnp.float32, -bound, bound)
    return wx_list, wh, b, (w_out, b_out)


if __name__ == "__main__":
    B, T, input_size, hidden, num_layers, output_dim = 2, 8, 16, 32, 2, 4

    key = jax.random.PRNGKey(0)
    kx, kp = jax.random.split(key)
    x = jax.random.normal(kx, (B, T, input_size), jnp.float32)
    lengths = [8, 5]                               # max(lengths) == T here

    wx_list, wh, b, _unused_head = init_params(kp, input_size, hidden, num_layers, output_dim)

    out = rnn_forward(x, lengths, wx_list, wh, b)
    out = jax.block_until_ready(out)

    ref = rnn_reference(x, lengths, wx_list, wh, b)
    assert out.shape == (B, max(lengths), hidden), out.shape
    assert jnp.allclose(out, ref, atol=1e-5, rtol=1e-5), float(jnp.max(jnp.abs(out - ref)))

    print("KERNEL_OK")
</pallas_src>

<mosaic_0001>
module attributes {stable_mosaic.version = 11 : i64} {
  func.func @kernel(%arg0: i32, %arg1: memref<16x1xi32, #tpu.memory_space<vmem>>, %arg2: memref<16x16xf32, #tpu.memory_space<vmem>>, %arg3: memref<16x32xf32, #tpu.memory_space<vmem>>, %arg4: memref<32x32xf32, #tpu.memory_space<vmem>>, %arg5: memref<2x32x32xf32, #tpu.memory_space<vmem>>, %arg6: memref<2x1x32xf32, #tpu.memory_space<vmem>>, %arg7: memref<16x32xf32, #tpu.memory_space<vmem>>, %arg8: memref<16x32xf32, #tpu.memory_space<vmem>>) attributes {dimension_semantics = [#tpu.dimension_semantics<arbitrary>], iteration_bounds = array<i64: 1>, scalar_prefetch = 0 : i64, scratch_operands = 1 : i64, tpu.core_type = #tpu.core_type<tc>, window_params = [{pipeline_mode = #tpu.pipeline_mode<synchronous>, transform_indices = @transform_0, window_bounds = array<i64: 16, 1>}, {pipeline_mode = #tpu.pipeline_mode<synchronous>, transform_indices = @transform_1, window_bounds = array<i64: 16, 16>}, {pipeline_mode = #tpu.pipeline_mode<synchronous>, transform_indices = @transform_2, window_bounds = array<i64: 16, 32>}, {pipeline_mode = #tpu.pipeline_mode<synchronous>, transform_indices = @transform_3, window_bounds = array<i64: 32, 32>}, {pipeline_mode = #tpu.pipeline_mode<synchronous>, transform_indices = @transform_4, window_bounds = array<i64: 2, 32, 32>}, {pipeline_mode = #tpu.pipeline_mode<synchronous>, transform_indices = @transform_5, window_bounds = array<i64: 2, 1, 32>}, {pipeline_mode = #tpu.pipeline_mode<synchronous>, transform_indices = @transform_6, window_bounds = array<i64: 16, 32>}]} {
    %c0 = arith.constant 0 : index
    %c0_0 = arith.constant 0 : index
    %0 = vector.load %arg2[%c0, %c0_0] : memref<16x16xf32, #tpu.memory_space<vmem>>, vector<16x16xf32>
    %c0_1 = arith.constant 0 : index
    %c0_2 = arith.constant 0 : index
    %1 = vector.load %arg3[%c0_1, %c0_2] : memref<16x32xf32, #tpu.memory_space<vmem>>, vector<16x32xf32>
    %cst = arith.constant dense<0.000000e+00> : vector<16x32xf32>
    %2 = tpu.matmul %0, %1, %cst {dimension_numbers = #tpu.dot_dimension_numbers<[1], [0], [0], [1], [0, 0, 1, 1], [], []>} : vector<16x16xf32>, vector<16x32xf32>, vector<16x32xf32> -> vector<16x32xf32>
    %c0_3 = arith.constant 0 : index
    %c0_4 = arith.constant 0 : index
    %c0_5 = arith.constant 0 : index
    %3 = vector.load %arg6[%c0_3, %c0_4, %c0_5] : memref<2x1x32xf32, #tpu.memory_space<vmem>>, vector<1x1x32xf32>
    %4 = vector.shape_cast %3 : vector<1x1x32xf32> to vector<1x32xf32>
    %5 = vector.broadcast %4 : vector<1x32xf32> to vector<16x32xf32>
    %6 = arith.addf %2, %5 : vector<16x32xf32>
    %c0_6 = arith.constant 0 : index
    %c0_7 = arith.constant 0 : index
    %7 = vector.load %arg8[%c0_6, %c0_7] : memref<16x32xf32, #tpu.memory_space<vmem>>, vector<16x32xf32>
    tpu.vector_store %arg8[%c0_6, %c0_7], %6 {strides = array<i32>} : memref<16x32xf32, #tpu.memory_space<vmem>>, vector<16x32xf32>,
    %c0_8 = arith.constant 0 : index
    %c0_9 = arith.constant 0 : index
    %c0_10 = arith.constant 0 : index
    %8 = vector.load %arg5[%c0_8, %c0_9, %c0_10] : memref<2x32x32xf32, #tpu.memory_space<vmem>>, vector<1x32x32xf32>
    %9 = vector.shape_cast %8 : vector<1x32x32xf32> to vector<32x32xf32>
    %cst_11 = arith.constant 0.000000e+00 : f32
    %10 = vector.broadcast %cst_11 : f32 to vector<2x32xf32>
    %c0_12 = arith.constant 0 : index
    %c0_13 = arith.constant 0 : index
    %11 = vector.load %arg8[%c0_12, %c0_13] : memref<16x32xf32, #tpu.memory_space<vmem>>, vector<2x32xf32>
    %cst_14 = arith.constant dense<0.000000e+00> : vector<2x32xf32>
    %12 = tpu.matmul %10, %9, %cst_14 {dimension_numbers = #tpu.dot_dimension_numbers<[1], [0], [0], [1], [0, 0, 1, 1], [], []>} : vector<2x32xf32>, vector<32x32xf32>, vector<2x32xf32> -> vector<2x32xf32>
    %13 = arith.addf %11, %12 : vector<2x32xf32>
    %cst_15 = arith.constant 0.000000e+00 : f32
    %14 = vector.broadcast %cst_15 : f32 to vector<2x32xf32>
    %15 = arith.maximumf %13, %14 : vector<2x32xf32>
    %c0_16 = arith.constant 0 : index
    %c0_17 = arith.constant 0 : index
    %16 = vector.load %arg8[%c0_16, %c0_17] : memref<16x32xf32, #tpu.memory_space<vmem>>, vector<2x32xf32>
    tpu.vector_store %arg8[%c0_16, %c0_17], %15 {strides = array<i32>} : memref<16x32xf32, #tpu.memory_space<vmem>>, vector<2x32xf32>,
    %c2 = arith.constant 2 : index
    %c0_18 = arith.constant 0 : index
    %17 = vector.load %arg8[%c2, %c0_18] : memref<16x32xf32, #tpu.memory_space<vmem>>, vector<2x32xf32>
    %cst_19 = arith.constant dense<0.000000e+00> : vector<2x32xf32>
    %18 = tpu.matmul %15, %9, %cst_19 {dimension_numbers = #tpu.dot_dimension_numbers<[1], [0], [0], [1], [0, 0, 1, 1], [], []>} : vector<2x32xf32>, vector<32x32xf32>, vector<2x32xf32> -> vector<2x32xf32>
    %19 = arith.addf %17, %18 : vector<2x32xf32>
    %cst_20 = arith.constant 0.000000e+00 : f32
    %20 = vector.broadcast %cst_20 : f32 to vector<2x32xf32>
    %21 = arith.maximumf %19, %20 : vector<2x32xf32>
    %c2_21 = arith.constant 2 : index
    %c0_22 = arith.constant 0 : index
    %22 = vector.load %arg8[%c2_21, %c0_22] : memref<16x32xf32, #tpu.memory_space<vmem>>, vector<2x32xf32>
    tpu.vector_store %arg8[%c2_21, %c0_22], %21 {strides = array<i32>} : memref<16x32xf32, #tpu.memory_space<vmem>>, vector<2x32xf32>,
    %c4 = arith.constant 4 : index
    %c0_23 = arith.constant 0 : index
    %23 = vector.load %arg8[%c4, %c0_23] : memref<16x32xf32, #tpu.memory_space<vmem>>, vector<2x32xf32>
    %cst_24 = arith.constant dense<0.000000e+00> : vector<2x32xf32>
    %24 = tpu.matmul %21, %9, %cst_24 {dimension_numbers = #tpu.dot_dimension_numbers<[1], [0], [0], [1], [0, 0, 1, 1], [], []>} : vector<2x32xf32>, vector<32x32xf32>, vector<2x32xf32> -> vector<2x32xf32>
    %25 = arith.addf %23, %24 : vector<2x32xf32>
    %cst_25 = arith.constant 0.000000e+00 : f32
    %26 = vector.broadcast %cst_25 : f32 to vector<2x32xf32>
    %27 = arith.maximumf %25, %26 : vector<2x32xf32>
    %c4_26 = arith.constant 4 : index
    %c0_27 = arith.constant 0 : index
    %28 = vector.load %arg8[%c4_26, %c0_27] : memref<16x32xf32, #tpu.memory_space<vmem>>, vector<2x32xf32>
    tpu.vector_store %arg8[%c4_26, %c0_27], %27 {strides = array<i32>} : memref<16x32xf32, #tpu.memory_space<vmem>>, vector<2x32xf32>,
    %c6 = arith.constant 6 : index
    %c0_28 = arith.constant 0 : index
    %29 = vector.load %arg8[%c6, %c0_28] : memref<16x32xf32, #tpu.memory_space<vmem>>, vector<2x32xf32>
    %cst_29 = arith.constant dense<0.000000e+00> : vector<2x32xf32>
    %30 = tpu.matmul %27, %9, %cst_29 {dimension_numbers = #tpu.dot_dimension_numbers<[1], [0], [0], [1], [0, 0, 1, 1], [], []>} : vector<2x32xf32>, vector<32x32xf32>, vector<2x32xf32> -> vector<2x32xf32>
    %31 = arith.addf %29, %30 : vector<2x32xf32>
    %cst_30 = arith.constant 0.000000e+00 : f32
    %32 = vector.broadcast %cst_30 : f32 to vector<2x32xf32>
    %33 = arith.maximumf %31, %32 : vector<2x32xf32>
    %c6_31 = arith.constant 6 : index
    %c0_32 = arith.constant 0 : index
    %34 = vector.load %arg8[%c6_31, %c0_32] : memref<16x32xf32, #tpu.memory_space<vmem>>, vector<2x32xf32>
    tpu.vector_store %arg8[%c6_31, %c0_32], %33 {strides = array<i32>} : memref<16x32xf32, #tpu.memory_space<vmem>>, vector<2x32xf32>,
    %c8 = arith.constant 8 : index
    %c0_33 = arith.constant 0 : index
    %35 = vector.load %arg8[%c8, %c0_33] : memref<16x32xf32, #tpu.memory_space<vmem>>, vector<2x32xf32>
    %cst_34 = arith.constant dense<0.000000e+00> : vector<2x32xf32>
    %36 = tpu.matmul %33, %9, %cst_34 {dimension_numbers = #tpu.dot_dimension_numbers<[1], [0], [0], [1], [0, 0, 1, 1], [], []>} : vector<2x32xf32>, vector<32x32xf32>, vector<2x32xf32> -> vector<2x32xf32>
    %37 = arith.addf %35, %36 : vector<2x32xf32>
    %cst_35 = arith.constant 0.000000e+00 : f32
    %38 = vector.broadcast %cst_35 : f32 to vector<2x32xf32>
    %39 = arith.maximumf %37, %38 : vector<2x32xf32>
    %c8_36 = arith.constant 8 : index
    %c0_37 = arith.constant 0 : index
    %40 = vector.load %arg8[%c8_36, %c0_37] : memref<16x32xf32, #tpu.memory_space<vmem>>, vector<2x32xf32>
    tpu.vector_store %arg8[%c8_36, %c0_37], %39 {strides = array<i32>} : memref<16x32xf32, #tpu.memory_space<vmem>>, vector<2x32xf32>,
    %c10 = arith.constant 10 : index
    %c0_38 = arith.constant 0 : index
    %41 = vector.load %arg8[%c10, %c0_38] : memref<16x32xf32, #tpu.memory_space<vmem>>, vector<2x32xf32>
    %cst_39 = arith.constant dense<0.000000e+00> : vector<2x32xf32>
    %42 = tpu.matmul %39, %9, %cst_39 {dimension_numbers = #tpu.dot_dimension_numbers<[1], [0], [0], [1], [0, 0, 1, 1], [], []>} : vector<2x32xf32>, vector<32x32xf32>, vector<2x32xf32> -> vector<2x32xf32>
    %43 = arith.addf %41, %42 : vector<2x32xf32>
    %cst_40 = arith.constant 0.000000e+00 : f32
    %44 = vector.broadcast %cst_40 : f32 to vector<2x32xf32>
    %45 = arith.maximumf %43, %44 : vector<2x32xf32>
    %c10_41 = arith.constant 10 : index
    %c0_42 = arith.constant 0 : index
    %46 = vector.load %arg8[%c10_41, %c0_42] : memref<16x32xf32, #tpu.memory_space<vmem>>, vector<2x32xf32>
    tpu.vector_store %arg8[%c10_41, %c0_42], %45 {strides = array<i32>} : memref<16x32xf32, #tpu.memory_space<vmem>>, vector<2x32xf32>,
    %c12 = arith.constant 12 : index
    %c0_43 = arith.constant 0 : index
    %47 = vector.load %arg8[%c12, %c0_43] : memref<16x32xf32, #tpu.memory_space<vmem>>, vector<2x32xf32>
    %cst_44 = arith.constant dense<0.000000e+00> : vector<2x32xf32>
    %48 = tpu.matmul %45, %9, %cst_44 {dimension_numbers = #tpu.dot_dimension_numbers<[1], [0], [0], [1], [0, 0, 1, 1], [], []>} : vector<2x32xf32>, vector<32x32xf32>, vector<2x32xf32> -> vector<2x32xf32>
    %49 = arith.addf %47, %48 : vector<2x32xf32>
    %cst_45 = arith.constant 0.000000e+00 : f32
    %50 = vector.broadcast %cst_45 : f32 to vector<2x32xf32>
    %51 = arith.maximumf %49, %50 : vector<2x32xf32>
    %c12_46 = arith.constant 12 : index
    %c0_47 = arith.constant 0 : index
    %52 = vector.load %arg8[%c12_46, %c0_47] : memref<16x32xf32, #tpu.memory_space<vmem>>, vector<2x32xf32>
    tpu.vector_store %arg8[%c12_46, %c0_47], %51 {strides = array<i32>} : memref<16x32xf32, #tpu.memory_space<vmem>>, vector<2x32xf32>,
    %c14 = arith.constant 14 : index
    %c0_48 = arith.constant 0 : index
    %53 = vector.load %arg8[%c14, %c0_48] : memref<16x32xf32, #tpu.memory_space<vmem>>, vector<2x32xf32>
    %cst_49 = arith.constant dense<0.000000e+00> : vector<2x32xf32>
    %54 = tpu.matmul %51, %9, %cst_49 {dimension_numbers = #tpu.dot_dimension_numbers<[1], [0], [0], [1], [0, 0, 1, 1], [], []>} : vector<2x32xf32>, vector<32x32xf32>, vector<2x32xf32> -> vector<2x32xf32>
    %55 = arith.addf %53, %54 : vector<2x32xf32>
    %cst_50 = arith.constant 0.000000e+00 : f32
    %56 = vector.broadcast %cst_50 : f32 to vector<2x32xf32>
    %57 = arith.maximumf %55, %56 : vector<2x32xf32>
    %c14_51 = arith.constant 14 : index
    %c0_52 = arith.constant 0 : index
    %58 = vector.load %arg8[%c14_51, %c0_52] : memref<16x32xf32, #tpu.memory_space<vmem>>, vector<2x32xf32>
    tpu.vector_store %arg8[%c14_51, %c0_52], %57 {strides = array<i32>} : memref<16x32xf32, #tpu.memory_space<vmem>>, vector<2x32xf32>,
    %c0_53 = arith.constant 0 : index
    %c0_54 = arith.constant 0 : index
    %59 = vector.load %arg8[%c0_53, %c0_54] : memref<16x32xf32, #tpu.memory_space<vmem>>, vector<16x32xf32>
    %c0_55 = arith.constant 0 : index
    %c0_56 = arith.constant 0 : index
    %60 = vector.load %arg4[%c0_55, %c0_56] : memref<32x32xf32, #tpu.memory_space<vmem>>, vector<32x32xf32>
    %cst_57 = arith.constant dense<0.000000e+00> : vector<16x32xf32>
    %61 = tpu.matmul %59, %60, %cst_57 {dimension_numbers = #tpu.dot_dimension_numbers<[1], [0], [0], [1], [0, 0, 1, 1], [], []>} : vector<16x32xf32>, vector<32x32xf32>, vector<16x32xf32> -> vector<16x32xf32>
    %c1 = arith.constant 1 : index
    %c0_58 = arith.constant 0 : index
    %c0_59 = arith.constant 0 : index
    %62 = vector.load %arg6[%c1, %c0_58, %c0_59] : memref<2x1x32xf32, #tpu.memory_space<vmem>>, vector<1x1x32xf32>
    %63 = vector.shape_cast %62 : vector<1x1x32xf32> to vector<1x32xf32>
    %64 = vector.broadcast %63 : vector<1x32xf32> to vector<16x32xf32>
    %65 = arith.addf %61, %64 : vector<16x32xf32>
    %c0_60 = arith.constant 0 : index
    %c0_61 = arith.constant 0 : index
    %66 = vector.load %arg8[%c0_60, %c0_61] : memref<16x32xf32, #tpu.memory_space<vmem>>, vector<16x32xf32>
    tpu.vector_store %arg8[%c0_60, %c0_61], %65 {strides = array<i32>} : memref<16x32xf32, #tpu.memory_space<vmem>>, vector<16x32xf32>,
    %c1_62 = arith.constant 1 : index
    %c0_63 = arith.constant 0 : index
    %c0_64 = arith.constant 0 : index
    %67 = vector.load %arg5[%c1_62, %c0_63, %c0_64] : memref<2x32x32xf32, #tpu.memory_space<vmem>>, vector<1x32x32xf32>
    %68 = vector.shape_cast %67 : vector<1x32x32xf32> to vector<32x32xf32>
    %cst_65 = arith.constant 0.000000e+00 : f32
    %69 = vector.broadcast %cst_65 : f32 to vector<2x32xf32>
    %c0_66 = arith.constant 0 : index
    %c0_67 = arith.constant 0 : index
    %70 = vector.load %arg8[%c0_66, %c0_67] : memref<16x32xf32, #tpu.memory_space<vmem>>, vector<2x32xf32>
    %cst_68 = arith.constant dense<0.000000e+00> : vector<2x32xf32>
    %71 = tpu.matmul %69, %68, %cst_68 {dimension_numbers = #tpu.dot_dimension_numbers<[1], [0], [0], [1], [0, 0, 1, 1], [], []>} : vector<2x32xf32>, vector<32x32xf32>, vector<2x32xf32> -> vector<2x32xf32>
    %72 = arith.addf %70, %71 : vector<2x32xf32>
    %cst_69 = arith.constant 0.000000e+00 : f32
    %73 = vector.broadcast %cst_69 : f32 to vector<2x32xf32>
    %74 = arith.maximumf %72, %73 : vector<2x32xf32>
    %c0_70 = arith.constant 0 : index
    %c0_71 = arith.constant 0 : index
    %75 = vector.load %arg8[%c0_70, %c0_71] : memref<16x32xf32, #tpu.memory_space<vmem>>, vector<2x32xf32>
    tpu.vector_store %arg8[%c0_70, %c0_71], %74 {strides = array<i32>} : memref<16x32xf32, #tpu.memory_space<vmem>>, vector<2x32xf32>,
    %c2_72 = arith.constant 2 : index
    %c0_73 = arith.constant 0 : index
    %76 = vector.load %arg8[%c2_72, %c0_73] : memref<16x32xf32, #tpu.memory_space<vmem>>, vector<2x32xf32>
    %cst_74 = arith.constant dense<0.000000e+00> : vector<2x32xf32>
    %77 = tpu.matmul %74, %68, %cst_74 {dimension_numbers = #tpu.dot_dimension_numbers<[1], [0], [0], [1], [0, 0, 1, 1], [], []>} : vector<2x32xf32>, vector<32x32xf32>, vector<2x32xf32> -> vector<2x32xf32>
    %78 = arith.addf %76, %77 : vector<2x32xf32>
    %cst_75 = arith.constant 0.000000e+00 : f32
    %79 = vector.broadcast %cst_75 : f32 to vector<2x32xf32>
    %80 = arith.maximumf %78, %79 : vector<2x32xf32>
    %c2_76 = arith.constant 2 : index
    %c0_77 = arith.constant 0 : index
    %81 = vector.load %arg8[%c2_76, %c0_77] : memref<16x32xf32, #tpu.memory_space<vmem>>, vector<2x32xf32>
    tpu.vector_store %arg8[%c2_76, %c0_77], %80 {strides = array<i32>} : memref<16x32xf32, #tpu.memory_space<vmem>>, vector<2x32xf32>,
    %c4_78 = arith.constant 4 : index
    %c0_79 = arith.constant 0 : index
    %82 = vector.load %arg8[%c4_78, %c0_79] : memref<16x32xf32, #tpu.memory_space<vmem>>, vector<2x32xf32>
    %cst_80 = arith.constant dense<0.000000e+00> : vector<2x32xf32>
    %83 = tpu.matmul %80, %68, %cst_80 {dimension_numbers = #tpu.dot_dimension_numbers<[1], [0], [0], [1], [0, 0, 1, 1], [], []>} : vector<2x32xf32>, vector<32x32xf32>, vector<2x32xf32> -> vector<2x32xf32>
    %84 = arith.addf %82, %83 : vector<2x32xf32>
    %cst_81 = arith.constant 0.000000e+00 : f32
    %85 = vector.broadcast %cst_81 : f32 to vector<2x32xf32>
    %86 = arith.maximumf %84, %85 : vector<2x32xf32>
    %c4_82 = arith.constant 4 : index
    %c0_83 = arith.constant 0 : index
    %87 = vector.load %arg8[%c4_82, %c0_83] : memref<16x32xf32, #tpu.memory_space<vmem>>, vector<2x32xf32>
    tpu.vector_store %arg8[%c4_82, %c0_83], %86 {strides = array<i32>} : memref<16x32xf32, #tpu.memory_space<vmem>>, vector<2x32xf32>,
    %c6_84 = arith.constant 6 : index
    %c0_85 = arith.constant 0 : index
    %88 = vector.load %arg8[%c6_84, %c0_85] : memref<16x32xf32, #tpu.memory_space<vmem>>, vector<2x32xf32>
    %cst_86 = arith.constant dense<0.000000e+00> : vector<2x32xf32>
    %89 = tpu.matmul %86, %68, %cst_86 {dimension_numbers = #tpu.dot_dimension_numbers<[1], [0], [0], [1], [0, 0, 1, 1], [], []>} : vector<2x32xf32>, vector<32x32xf32>, vector<2x32xf32> -> vector<2x32xf32>
    %90 = arith.addf %88, %89 : vector<2x32xf32>
    %cst_87 = arith.constant 0.000000e+00 : f32
    %91 = vector.broadcast %cst_87 : f32 to vector<2x32xf32>
    %92 = arith.maximumf %90, %91 : vector<2x32xf32>
    %c6_88 = arith.constant 6 : index
    %c0_89 = arith.constant 0 : index
    %93 = vector.load %arg8[%c6_88, %c0_89] : memref<16x32xf32, #tpu.memory_space<vmem>>, vector<2x32xf32>
    tpu.vector_store %arg8[%c6_88, %c0_89], %92 {strides = array<i32>} : memref<16x32xf32, #tpu.memory_space<vmem>>, vector<2x32xf32>,
    %c8_90 = arith.constant 8 : index
    %c0_91 = arith.constant 0 : index
    %94 = vector.load %arg8[%c8_90, %c0_91] : memref<16x32xf32, #tpu.memory_space<vmem>>, vector<2x32xf32>
    %cst_92 = arith.constant dense<0.000000e+00> : vector<2x32xf32>
    %95 = tpu.matmul %92, %68, %cst_92 {dimension_numbers = #tpu.dot_dimension_numbers<[1], [0], [0], [1], [0, 0, 1, 1], [], []>} : vector<2x32xf32>, vector<32x32xf32>, vector<2x32xf32> -> vector<2x32xf32>
    %96 = arith.addf %94, %95 : vector<2x32xf32>
    %cst_93 = arith.constant 0.000000e+00 : f32
    %97 = vector.broadcast %cst_93 : f32 to vector<2x32xf32>
    %98 = arith.maximumf %96, %97 : vector<2x32xf32>
    %c8_94 = arith.constant 8 : index
    %c0_95 = arith.constant 0 : index
    %99 = vector.load %arg8[%c8_94, %c0_95] : memref<16x32xf32, #tpu.memory_space<vmem>>, vector<2x32xf32>
    tpu.vector_store %arg8[%c8_94, %c0_95], %98 {strides = array<i32>} : memref<16x32xf32, #tpu.memory_space<vmem>>, vector<2x32xf32>,
    %c10_96 = arith.constant 10 : index
    %c0_97 = arith.constant 0 : index
    %100 = vector.load %arg8[%c10_96, %c0_97] : memref<16x32xf32, #tpu.memory_space<vmem>>, vector<2x32xf32>
    %cst_98 = arith.constant dense<0.000000e+00> : vector<2x32xf32>
    %101 = tpu.matmul %98, %68, %cst_98 {dimension_numbers = #tpu.dot_dimension_numbers<[1], [0], [0], [1], [0, 0, 1, 1], [], []>} : vector<2x32xf32>, vector<32x32xf32>, vector<2x32xf32> -> vector<2x32xf32>
    %102 = arith.addf %100, %101 : vector<2x32xf32>
    %cst_99 = arith.constant 0.000000e+00 : f32
    %103 = vector.broadcast %cst_99 : f32 to vector<2x32xf32>
    %104 = arith.maximumf %102, %103 : vector<2x32xf32>
    %c10_100 = arith.constant 10 : index
    %c0_101 = arith.constant 0 : index
    %105 = vector.load %arg8[%c10_100, %c0_101] : memref<16x32xf32, #tpu.memory_space<vmem>>, vector<2x32xf32>
    tpu.vector_store %arg8[%c10_100, %c0_101], %104 {strides = array<i32>} : memref<16x32xf32, #tpu.memory_space<vmem>>, vector<2x32xf32>,
    %c12_102 = arith.constant 12 : index
    %c0_103 = arith.constant 0 : index
    %106 = vector.load %arg8[%c12_102, %c0_103] : memref<16x32xf32, #tpu.memory_space<vmem>>, vector<2x32xf32>
    %cst_104 = arith.constant dense<0.000000e+00> : vector<2x32xf32>
    %107 = tpu.matmul %104, %68, %cst_104 {dimension_numbers = #tpu.dot_dimension_numbers<[1], [0], [0], [1], [0, 0, 1, 1], [], []>} : vector<2x32xf32>, vector<32x32xf32>, vector<2x32xf32> -> vector<2x32xf32>
    %108 = arith.addf %106, %107 : vector<2x32xf32>
    %cst_105 = arith.constant 0.000000e+00 : f32
    %109 = vector.broadcast %cst_105 : f32 to vector<2x32xf32>
    %110 = arith.maximumf %108, %109 : vector<2x32xf32>
    %c12_106 = arith.constant 12 : index
    %c0_107 = arith.constant 0 : index
    %111 = vector.load %arg8[%c12_106, %c0_107] : memref<16x32xf32, #tpu.memory_space<vmem>>, vector<2x32xf32>
    tpu.vector_store %arg8[%c12_106, %c0_107], %110 {strides = array<i32>} : memref<16x32xf32, #tpu.memory_space<vmem>>, vector<2x32xf32>,
    %c14_108 = arith.constant 14 : index
    %c0_109 = arith.constant 0 : index
    %112 = vector.load %arg8[%c14_108, %c0_109] : memref<16x32xf32, #tpu.memory_space<vmem>>, vector<2x32xf32>
    %cst_110 = arith.constant dense<0.000000e+00> : vector<2x32xf32>
    %113 = tpu.matmul %110, %68, %cst_110 {dimension_numbers = #tpu.dot_dimension_numbers<[1], [0], [0], [1], [0, 0, 1, 1], [], []>} : vector<2x32xf32>, vector<32x32xf32>, vector<2x32xf32> -> vector<2x32xf32>
    %114 = arith.addf %112, %113 : vector<2x32xf32>
    %cst_111 = arith.constant 0.000000e+00 : f32
    %115 = vector.broadcast %cst_111 : f32 to vector<2x32xf32>
    %116 = arith.maximumf %114, %115 : vector<2x32xf32>
    %c14_112 = arith.constant 14 : index
    %c0_113 = arith.constant 0 : index
    %117 = vector.load %arg8[%c14_112, %c0_113] : memref<16x32xf32, #tpu.memory_space<vmem>>, vector<2x32xf32>
    tpu.vector_store %arg8[%c14_112, %c0_113], %116 {strides = array<i32>} : memref<16x32xf32, #tpu.memory_space<vmem>>, vector<2x32xf32>,
    %c0_114 = arith.constant 0 : index
    %c0_115 = arith.constant 0 : index
    %118 = vector.load %arg1[%c0_114, %c0_115] : memref<16x1xi32, #tpu.memory_space<vmem>>, vector<16x1xi32>
    %c0_i32 = arith.constant 0 : i32
    %119 = vector.broadcast %c0_i32 : i32 to vector<16x1xi32>
    %120 = arith.cmpi sgt, %118, %119 : vector<16x1xi32>
    %c0_116 = arith.constant 0 : index
    %c0_117 = arith.constant 0 : index
    %121 = vector.load %arg8[%c0_116, %c0_117] : memref<16x32xf32, #tpu.memory_space<vmem>>, vector<16x32xf32>
    %cst_118 = arith.constant 0.000000e+00 : f32
    %122 = vector.shape_cast %120 : vector<16x1xi1> to vector<16x1xi1>
    %123 = vector.broadcast %122 : vector<16x1xi1> to vector<16x32xi1>
    %124 = vector.broadcast %cst_118 : f32 to vector<16x32xf32>
    %125 = arith.select %123, %121, %124 : vector<16x32xi1>, vector<16x32xf32>
    %c0_119 = arith.constant 0 : index
    %c0_120 = arith.constant 0 : index
    %126 = vector.load %arg7[%c0_119, %c0_120] : memref<16x32xf32, #tpu.memory_space<vmem>>, vector<16x32xf32>
    tpu.vector_store %arg7[%c0_119, %c0_120], %125 {strides = array<i32>} : memref<16x32xf32, #tpu.memory_space<vmem>>, vector<16x32xf32>,
    return
  }
  func.func @transform_0(%arg0: i32) -> (i32, i32) {
    %c0_i32 = arith.constant 0 : i32
    %c0_i32_0 = arith.constant 0 : i32
    %c0_i32_1 = arith.constant 0 : i32
    return %c0_i32, %c0_i32_0 : i32, i32
  }
  func.func @transform_1(%arg0: i32) -> (i32, i32) {
    %c0_i32 = arith.constant 0 : i32
    %c0_i32_0 = arith.constant 0 : i32
    %c0_i32_1 = arith.constant 0 : i32
    return %c0_i32, %c0_i32_0 : i32, i32
  }
  func.func @transform_2(%arg0: i32) -> (i32, i32) {
    %c0_i32 = arith.constant 0 : i32
    %c0_i32_0 = arith.constant 0 : i32
    %c0_i32_1 = arith.constant 0 : i32
    return %c0_i32, %c0_i32_0 : i32, i32
  }
  func.func @transform_3(%arg0: i32) -> (i32, i32) {
    %c0_i32 = arith.constant 0 : i32
    %c0_i32_0 = arith.constant 0 : i32
    %c0_i32_1 = arith.constant 0 : i32
    return %c0_i32, %c0_i32_0 : i32, i32
  }
  func.func @transform_4(%arg0: i32) -> (i32, i32, i32) {
    %c0_i32 = arith.constant 0 : i32
    %c0_i32_0 = arith.constant 0 : i32
    %c0_i32_1 = arith.constant 0 : i32
    %c0_i32_2 = arith.constant 0 : i32
    return %c0_i32, %c0_i32_0, %c0_i32_1 : i32, i32, i32
  }
  func.func @transform_5(%arg0: i32) -> (i32, i32, i32) {
    %c0_i32 = arith.constant 0 : i32
    %c0_i32_0 = arith.constant 0 : i32
    %c0_i32_1 = arith.constant 0 : i32
    %c0_i32_2 = arith.constant 0 : i32
    return %c0_i32, %c0_i32_0, %c0_i32_1 : i32, i32, i32
  }
  func.func @transform_6(%arg0: i32) -> (i32, i32) {
    %c0_i32 = arith.constant 0 : i32
    %c0_i32_0 = arith.constant 0 : i32
    %c0_i32_1 = arith.constant 0 : i32
    return %c0_i32, %c0_i32_0 : i32, i32
  }
}

</mosaic_0001>

<bundles_post_ra>
// kernel: tpu_custom_call.1
= control target key start
LH: loop header
LB: loop body
LE: loop exit
PB: predicated region body
PF: predicated region fallthrough
CT: control target
= control target key end

     0   :  { %11 = vsyncpa [#allocation4], 0  ;;  %s2329_s0 = inlined_call_operand.vmem [shape: s32[16,1], index: 0, kind: input, shape index: {}]   ;;  %s2330_s1 = inlined_call_operand.vmem [shape: f32[16,16], index: 1, kind: input, shape index: {}]   ;;  %s2331_s2 = inlined_call_operand.hbm [shape: f32[16,32], index: 2, kind: input, shape index: {}]   ;;  %s2332_s3 = inlined_call_operand.hbm [shape: f32[32,32], index: 3, kind: input, shape index: {}]   ;;  %s2333_s4 = inlined_call_operand.hbm [shape: f32[2,32,32], index: 4, kind: input, shape index: {}]   ;;  %s2334_s5 = inlined_call_operand.vmem [shape: f32[2,1,32], index: 5, kind: input, shape index: {}]   ;;  %s2335_s6 = inlined_call_operand.hbm [shape: f32[16,32], index: 6, kind: output, shape index: {}]  }
   0x1   :  { %12 = vsyncpa [#allocation7], 0 }
   0x2   :  { %13 = vsyncpa [#allocation5], 0  ;;  %s2053_s21 = smov [#allocation6]   ;;  %s2054_s23 = smov [#allocation3]  }
   0x3   :  { %s35_s22 = sshll.u32 %s2053_s21, 4  ;;  %s23_s24 = sshll.u32 %s2054_s23, 4  ;;  %s36_s22 = int_to_ptr.vmem [resolvable:$true] %s35_s22  ;;  %s2098_s24 = int_to_ptr.vmem [resolvable:$true] %s23_s24 }
   0x4   :  { %s1959_s27 = scalar_lea.hbm %s2332_s3, 512 }
   0x5   :  { %p1960_p0 = scmp.ne.s32.totalorder %s2332_s3, %s1959_s27  ;;  %p1963_p1 = scmp.lt.u32.totalorder %s1959_s27, %s2332_s3 }
   0x7   :  { %p1965_p2 = pnand %p1963_p1, %p1960_p0 }
   0x9   :  { %1968 = shalt.err (!%p1965_p2)
}
   0xa   :  { %s1969_s8 = scalar_lea.vmem %s36_s22, 512  ;;  %p1974_p4 = scmp.lt.s32.totalorder %s36_s22, %s36_s22 }
   0xb   :  { %p1970_p3 = scmp.ne.s32.totalorder %s36_s22, %s1969_s8  ;;  %p1975_p5 = scmp.lt.s32.totalorder %s1969_s8, %s1969_s8 }
   0xd   :  { %p1976_p6 = por %p1975_p5, %p1974_p4 }
   0xf   :  { %p1977_p7 = pnand %p1976_p6, %p1970_p3 }
  0x11   :  { %1980 = shalt.err (!%p1977_p7)
}
  0x12   :  { %s2055_s9 = smov 128   ;;  %s2056_s10 = smov 8  }
  0x13   :  { %41 = dma.hbm_to_vmem [thread:$0]  %s2332_s3, 512, %s36_s22, [#allocation7], %s2055_s9, %s2055_s9, %s2056_s10  }
  0x14   :  { %s1981_s15 = scalar_lea.hbm %s2331_s2, 256 }
  0x15   :  { %p1982_p8 = scmp.ne.s32.totalorder %s2331_s2, %s1981_s15  ;;  %p1985_p9 = scmp.lt.u32.totalorder %s1981_s15, %s2331_s2 }
  0x17   :  { %p1987_p10 = pnand %p1985_p9, %p1982_p8 }
  0x19   :  { %1990 = shalt.err (!%p1987_p10)
}
  0x1a   :  { %s1991_s20 = scalar_lea.vmem %s2098_s24, 256  ;;  %p1996_p12 = scmp.lt.s32.totalorder %s2098_s24, %s2098_s24 }
  0x1b   :  { %p1992_p11 = scmp.ne.s32.totalorder %s2098_s24, %s1991_s20  ;;  %p1997_p13 = scmp.lt.s32.totalorder %s1991_s20, %s1991_s20 }
  0x1d   :  { %p1998_p0 = por %p1997_p13, %p1996_p12 }
  0x1f   :  { %p1999_p1 = pnand %p1998_p0, %p1992_p11 }
  0x21   :  { %2002 = shalt.err (!%p1999_p1)
}
  0x22   :  { %29 = dma.hbm_to_vmem [thread:$0]  %s2331_s2, 256, %s2098_s24, [#allocation4], %s2055_s9, %s2055_s9, %s2056_s10  }
  0x23   :  { %s2057_s22 = smov [#allocation8]   ;;  %s2003_s27 = scalar_lea.hbm %s2333_s4, 1024 }
  0x24   :  { %s47_s23 = sshll.u32 %s2057_s22, 4  ;;  %p2004_p2 = scmp.ne.s32.totalorder %s2333_s4, %s2003_s27  ;;  %s48_s23 = int_to_ptr.vmem [resolvable:$true] %s47_s23 }
  0x25   :  { %p2007_p3 = scmp.lt.u32.totalorder %s2003_s27, %s2333_s4 }
  0x27   :  { %p2009_p4 = pnand %p2007_p3, %p2004_p2 }
  0x29   :  { %2012 = shalt.err (!%p2009_p4)
}
  0x2a   :  { %s2013_s8 = scalar_lea.vmem %s48_s23, 1024  ;;  %p2018_p6 = scmp.lt.s32.totalorder %s48_s23, %s48_s23 }
  0x2b   :  { %p2014_p5 = scmp.ne.s32.totalorder %s48_s23, %s2013_s8  ;;  %p2019_p7 = scmp.lt.s32.totalorder %s2013_s8, %s2013_s8 }
  0x2d   :  { %p2020_p8 = por %p2019_p7, %p2018_p6 }
  0x2f   :  { %p2021_p9 = pnand %p2020_p8, %p2014_p5 }
  0x31   :  { %2024 = shalt.err (!%p2021_p9)
}
  0x32   :  { %53 = dma.hbm_to_vmem [thread:$0]  %s2333_s4, 1024, %s48_s23, [#allocation7], %s2055_s9, %s2055_s9, %s2056_s10  }
  0x33   :  { %2047 = dma.done.wait [#allocation4], 256  }
  0x34   :  { %2048 = vsyncadd [#allocation4], 4294967040 }
  0x35   :  { %2049 = dma.done.wait [#allocation7], 1536  }
  0x36   :  { %2050 = vsyncadd [#allocation7], 4294965760  ;;  %v2058_v0 = vmov 0.0|0.0   ;;  %vm2059_vm0 = vmmov 0   ;;  %v2060_v1 = vmov 0.0   ;;  %vm76_vm1 = vcmask 130048  }
  0x37   :  { %1844 = vmatprep.subr.bf16.mxu1 %v2058_v0  ;;  %1661 = vmatprep.mubr.msk.f32.mxu1 %vm2059_vm0, %v2060_v1  ;;  %v67_v2 = vld [vmem:[#allocation3] sm:$0xff]  ;;  %v68_v3 = vld [vmem:[#allocation3 + $0x8] sm:$0xff]  ;;  %v161_v6 = vld [vmem:[#allocation8] sm:$0xff]  ;;  %vm158_vm2 = vcmask 261120   ;;  %vm241_vm3 = vcmask 254976  }
  0x38   :  { %v65_v4 = vld [vmem:[%s2330_s1] sm:$0xff]  ;;  %v1840_v5 = vpack.c.bf16 %v68_v3, %v67_v2  ;;  %v162_v7 = vld [vmem:[#allocation8 + $0x8] sm:$0xff]  ;;  %v164_v10 = vld [vmem:[#allocation8 + $0x18] sm:$0xff] }
  0x39   :  { %1650 = vmatprep.mubr.msk.f32.mxu0 %vm76_vm1, %v65_v4  ;;  %v2157_v8 = vpack.c.bf16 %v162_v7, %v161_v6  ;;  %v163_v9 = vld [vmem:[#allocation8 + $0x10] sm:$0xff]  ;;  %v66_v11 = vld [vmem:[%s2330_s1 + $0x8] sm:$0xff]  ;;  %v784_v54 = vld [vmem:[#allocation6] sm:$0xff] }
  0x3a   :  { %1841 = vmatprep.subr.bf16.mxu0 %v1840_v5  ;;  %v2163_v12 = vpack.c.bf16 %v164_v10, %v163_v9  ;;  %v1535_v13 = vld [vmem:[%s2334_s5] ss:$0 sm:$0xff]  ;;  %v785_v55 = vld [vmem:[#allocation6 + $0x8] sm:$0xff]  ;;  %v787_v58 = vld [vmem:[#allocation6 + $0x18] sm:$0xff] }
  0x3b   :  { %1843 = vmatpush3.bf16.msra.mxu0 %v1840_v5  ;;  %1846 = vmatpush3.bf16.msra.mxu1 %v2157_v8  ;;  %v1892_v56 = vpack.c.bf16 %v785_v55, %v784_v54  ;;  %v786_v57 = vld [vmem:[#allocation6 + $0x10] sm:$0xff]  ;;  %v880_v60 = vld [vmem:[#allocation8 + $0x20] sm:$0xff]  ;;  %v881_v61 = vld [vmem:[#allocation8 + $0x28] sm:$0xff] }
  0x3c   :  { %1847 = vmatprep.subr.bf16.mxu1 %v2058_v0  ;;  %1850 = vmatprep.subr.bf16.mxu0 %v2058_v0  ;;  %v1896_v59 = vpack.c.bf16 %v787_v58, %v786_v57  ;;  %v882_v62 = vld [vmem:[#allocation8 + $0x30] sm:$0xff]  ;;  %v2235_v63 = vpack.c.bf16 %v881_v61, %v880_v60  ;;  %v883_v2 = vld [vmem:[#allocation8 + $0x38] sm:$0xff] }
  0x3d   :  { %v2238_v3 = vpack.c.bf16 %v883_v2, %v882_v62 }
  0x3e   :  { %1651 = vmatmul.mubr.msk.f32.vlgmr.msra.gmra.mrb[0].mxu0 %vm76_vm1, %v66_v11 }
  0x3f   :  { %1849 = vmatpush3.bf16.msra.mxu1 %v2163_v12  ;;  %1852 = vmatpush3.bf16.msra.mxu0 %v2157_v8 }
  0x40   :  { %1853 = vmatprep.subr.bf16.mxu0 %v2058_v0  ;;  %1672 = vmatprep.mubr.msk.f32.mxu0 %vm2059_vm0, %v2060_v1 }
  0x41   :  { %1856 = vmatprep.subr.bf16.mxu1 %v2058_v0 }
  0x42   :  { %1662 = vmatmul.mubr.f32.vlgmr.msra.gmra.mrb[0].mxu1 %v2060_v1 }
  0x43   :  { %1855 = vmatpush3.bf16.msra.mxu0 %v2163_v12  ;;  %1858 = vmatpush3.bf16.msra.mxu1 %v2157_v8 }
  0x44   :  { %1859 = vmatprep.subr.bf16.mxu1 %v2058_v0  ;;  %1683 = vmatprep.mubr.msk.f32.mxu1 %vm2059_vm0, %v2060_v1 }
  0x45   :  { %1862 = vmatprep.subr.bf16.mxu0 %v2058_v0 }
  0x47   :  { %1861 = vmatpush3.bf16.msra.mxu1 %v2163_v12 }
  0x48   :  { %1868 = vmatprep.subr.bf16.mxu1 %v2058_v0 }
 0x111   :  { %v1652_v14 = vpop.f32.mrb[0].mxu0 }
 0x112   :  { %v155_v15 = vadd.f32 %v1652_v14, %v1535_v13  ;;  %v149_v16 = vpop.f32.mrb[1].mxu0 }
 0x113   :  { %v150_v17 = vadd.f32 %v1535_v13, %v149_v16 }
 0x114   :  { %160 = vst.msk [vmem:[#allocation2 + $0x8] sm:$0xff] %vm158_vm2, %v155_v15 }
 0x115   :  { %159 = vst.msk [vmem:[#allocation2] sm:$0xff] %vm158_vm2, %v150_v17  ;;  %v235_v18 = vpop.f32.mrb[0].mxu1 }
 0x116   :  { %v1663_v19 = vpop.f32.mrb[1].mxu1 }
 0x11b   :  { %v474_v38 = vld [vmem:[#allocation2 + $0x8] sm:$0x3]  ;;  %v551_v43 = vld [vmem:[#allocation2 + $0xa] sm:$0x3]  ;;  %v628_v49 = vld [vmem:[#allocation2 + $0xc] sm:$0x3] }
 0x11c   :  { %v165_v20 = vld [vmem:[#allocation2] sm:$0x3]  ;;  %v243_v23 = vld [vmem:[#allocation2 + $0x2] sm:$0x3]  ;;  %v320_v28 = vld [vmem:[#allocation2 + $0x4] sm:$0x3] }
 0x11d   :  { %v239_v21 = vadd.f32 %v235_v18, %v165_v20  ;;  %v397_v33 = vld [vmem:[#allocation2 + $0x6] sm:$0x3]  ;;  %v705_v4 = vld [vmem:[#allocation2 + $0xe] sm:$0x3] }
 0x11f   :  { %v240_v22 = vmax.f32 %v239_v21, 0.0 }
 0x121   :  { %242 = vst.msk [vmem:[#allocation2] sm:$0x3] %vm241_vm3, %v240_v22  ;;  %1673 = vmatmul.mubr.msk.f32.vlgmr.msra.gmra.mrb[2].mxu0 %vm158_vm2, %v240_v22 }
 0x122   :  { %1864 = vmatpush3.bf16.msra.mxu0 %v2157_v8  ;;  %1694 = vmatprep.mubr.msk.f32.mxu0 %vm2059_vm0, %v2060_v1 }
 0x123   :  { %1865 = vmatprep.subr.bf16.mxu0 %v2058_v0 }
 0x126   :  { %1867 = vmatpush3.bf16.msra.mxu0 %v2163_v12 }
 0x127   :  { %1874 = vmatprep.subr.bf16.mxu0 %v2058_v0 }
 0x1f4   :  { %v313_v24 = vpop.f32.mrb[2].mxu0 }
 0x1f5   :  { %v317_v25 = vadd.f32 %v313_v24, %v243_v23  ;;  %v1674_v26 = vpop.f32.mrb[3].mxu0 }
 0x1f6   :  { %v2061_v26 = vmov 0  }
 0x1f7   :  { %v318_v27 = vmax.f32 %v317_v25, 0.0  ;;  %v1497_v25 = vld [vmem:[%s2329_s0] sm:$0xff]  ;;  %1958 = vset.pattern.permute.xlu0 %v2061_v26 }
 0x1f8   :  { %vm1499_vm4 = vcmp.gt.s32.totalorder %v1497_v25, 0 }
 0x1f9   :  { %319 = vst.msk [vmem:[#allocation2 + $0x2] sm:$0x3] %vm241_vm3, %v318_v27  ;;  %1684 = vmatmul.mubr.msk.f32.vlgmr.msra.gmra.mrb[2].mxu1 %vm158_vm2, %v318_v27  ;;  %v1503_v27 = vsel %vm1499_vm4, 1, %v2061_v26 }
 0x1fa   :  { %1870 = vmatpush3.bf16.msra.mxu1 %v2157_v8  ;;  %1705 = vmatprep.mubr.msk.f32.mxu1 %vm2059_vm0, %v2060_v1 }
 0x1fb   :  { %1871 = vmatprep.subr.bf16.mxu1 %v2058_v0  ;;  %1506 = vperm.xlu0 %1958, %v1503_v27  }
 0x1fe   :  { %1873 = vmatpush3.bf16.msra.mxu1 %v2163_v12 }
 0x1ff   :  { %1880 = vmatprep.subr.bf16.mxu1 %v2058_v0 }
 0x2cc   :  { %v390_v29 = vpop.f32.mrb[2].mxu1 }
 0x2cd   :  { %v394_v30 = vadd.f32 %v390_v29, %v320_v28  ;;  %v1685_v31 = vpop.f32.mrb[3].mxu1 }
 0x2cf   :  { %v395_v32 = vmax.f32 %v394_v30, 0.0 }
 0x2d1   :  { %396 = vst.msk [vmem:[#allocation2 + $0x4] sm:$0x3] %vm241_vm3, %v395_v32  ;;  %1695 = vmatmul.mubr.msk.f32.vlgmr.msra.gmra.mrb[4].mxu0 %vm158_vm2, %v395_v32 }
 0x2d2   :  { %1876 = vmatpush3.bf16.msra.mxu0 %v2157_v8  ;;  %1716 = vmatprep.mubr.msk.f32.mxu0 %vm2059_vm0, %v2060_v1 }
 0x2d3   :  { %1877 = vmatprep.subr.bf16.mxu0 %v2058_v0 }
 0x2d6   :  { %1879 = vmatpush3.bf16.msra.mxu0 %v2163_v12 }
 0x2d7   :  { %1886 = vmatprep.subr.bf16.mxu0 %v2058_v0 }
 0x3a4   :  { %v467_v34 = vpop.f32.mrb[4].mxu0 }
 0x3a5   :  { %v471_v35 = vadd.f32 %v467_v34, %v397_v33  ;;  %v1696_v36 = vpop.f32.mrb[5].mxu0 }
 0x3a7   :  { %v472_v37 = vmax.f32 %v471_v35, 0.0 }
 0x3a9   :  { %473 = vst.msk [vmem:[#allocation2 + $0x6] sm:$0x3] %vm241_vm3, %v472_v37  ;;  %1706 = vmatmul.mubr.msk.f32.vlgmr.msra.gmra.mrb[4].mxu1 %vm158_vm2, %v472_v37 }
 0x3aa   :  { %1882 = vmatpush3.bf16.msra.mxu1 %v2157_v8  ;;  %1727 = vmatprep.mubr.msk.f32.mxu1 %vm2059_vm0, %v2060_v1 }
 0x3ab   :  { %1883 = vmatprep.subr.bf16.mxu1 %v2058_v0 }
 0x3ae   :  { %1885 = vmatpush3.bf16.msra.mxu1 %v2163_v12 }
 0x3af   :  { %1893 = vmatprep.subr.bf16.mxu1 %v1892_v56 }
 0x3b0   :  { %v782_v48 = vld [vmem:[#allocation2] sm:$0xff] }
 0x47c   :  { %v544_v39 = vpop.f32.mrb[4].mxu1 }
 0x47d   :  { %v548_v40 = vadd.f32 %v544_v39, %v474_v38  ;;  %v1707_v41 = vpop.f32.mrb[5].mxu1  ;;  %v1507_v38 = vpop.permute.xlu0 %1506 }
 0x47e   :  { %vm1511_vm5 = vcmp.eq.s32.totalorder %v1507_v38, 1 }
 0x47f   :  { %v549_v42 = vmax.f32 %v548_v40, 0.0 }
 0x481   :  { %550 = vst.msk [vmem:[#allocation2 + $0x8] sm:$0x3] %vm241_vm3, %v549_v42  ;;  %1717 = vmatmul.mubr.msk.f32.vlgmr.msra.gmra.mrb[6].mxu0 %vm158_vm2, %v549_v42 }
 0x482   :  { %1888 = vmatpush3.bf16.msra.mxu0 %v2157_v8  ;;  %1738 = vmatprep.mubr.msk.f32.mxu0 %vm2059_vm0, %v2060_v1 }
 0x483   :  { %1889 = vmatprep.subr.bf16.mxu0 %v2058_v0 }
 0x486   :  { %1891 = vmatpush3.bf16.msra.mxu0 %v2163_v12  ;;  %v1546_v12 = vld [vmem:[%s2334_s5 + $0x1] ss:$0 sm:$0xff] }
 0x487   :  { %1900 = vmatprep.subr.bf16.mxu0 %v2058_v0 }
 0x554   :  { %v621_v44 = vpop.f32.mrb[6].mxu0 }
 0x555   :  { %v625_v45 = vadd.f32 %v621_v44, %v551_v43  ;;  %v1718_v46 = vpop.f32.mrb[7].mxu0 }
 0x557   :  { %v626_v47 = vmax.f32 %v625_v45, 0.0 }
 0x559   :  { %627 = vst.msk [vmem:[#allocation2 + $0xa] sm:$0x3] %vm241_vm3, %v626_v47  ;;  %1728 = vmatmul.mubr.msk.f32.vlgmr.msra.gmra.mrb[6].mxu1 %vm158_vm2, %v626_v47 }
 0x55a   :  { %1749 = vmatprep.mubr.msk.f32.mxu1 %vm158_vm2, %v782_v48  ;;  %1895 = vmatpush3.bf16.msra.mxu1 %v1892_v56 }
 0x55b   :  { %1897 = vmatprep.subr.bf16.mxu1 %v1896_v59 }
 0x55e   :  { %1899 = vmatpush3.bf16.msra.mxu1 %v1896_v59 }
 0x55f   :  { %1906 = vmatprep.subr.bf16.mxu1 %v2058_v0 }
 0x62c   :  { %v698_v50 = vpop.f32.mrb[6].mxu1 }
 0x62d   :  { %v702_v51 = vadd.f32 %v698_v50, %v628_v49  ;;  %v1729_v52 = vpop.f32.mrb[7].mxu1 }
 0x62f   :  { %v703_v53 = vmax.f32 %v702_v51, 0.0  ;;  %v1498_v51 = vld [vmem:[%s2329_s0 + $0x8] sm:$0xff]  ;;  %s2062_s0 = smov [#allocation9]  }
 0x630   :  { %vm1500_vm6 = vcmp.gt.s32.totalorder %v1498_v51, 0  ;;  %s1522_s20 = sshll.u32 %s2062_s0, 4  ;;  %s1523_s20 = int_to_ptr.vmem [resolvable:$true] %s1522_s20 }
 0x631   :  { %704 = vst.msk [vmem:[#allocation2 + $0xc] sm:$0x3] %vm241_vm3, %v703_v53  ;;  %1739 = vmatmul.mubr.msk.f32.vlgmr.msra.gmra.mrb[8].mxu0 %vm158_vm2, %v703_v53  ;;  %v1504_v52 = vsel %vm1500_vm6, 1, %v2061_v26  ;;  %s2025_s3 = scalar_lea.vmem %s1523_s20, 256  ;;  %p2030_p11 = scmp.lt.s32.totalorder %s1523_s20, %s1523_s20 }
 0x632   :  { %1760 = vmatprep.mubr.msk.f32.mxu0 %vm2059_vm0, %v2060_v1  ;;  %1902 = vmatpush3.bf16.msra.mxu0 %v2235_v63  ;;  %p2026_p10 = scmp.ne.s32.totalorder %s1523_s20, %s2025_s3  ;;  %p2031_p12 = scmp.lt.s32.totalorder %s2025_s3, %s2025_s3 }
 0x633   :  { %1903 = vmatprep.subr.bf16.mxu0 %v2058_v0  ;;  %1509 = vperm.xlu0 %1958, %v1504_v52  }
 0x634   :  { %p2032_p13 = por %p2031_p12, %p2030_p11 }
 0x636   :  { %1905 = vmatpush3.bf16.msra.mxu0 %v2238_v3  ;;  %p2033_p0 = pnand %p2032_p13, %p2026_p10 }
 0x637   :  { %1912 = vmatprep.subr.bf16.mxu0 %v2058_v0 }
 0x639   :  { %1761 = vmatmul.mubr.f32.vlgmr.msra.gmra.mrb[10].mxu0 %v2060_v1 }
 0x63a   :  { %1914 = vmatpush3.bf16.msra.mxu0 %v2235_v63  ;;  %1782 = vmatprep.mubr.msk.f32.mxu0 %vm2059_vm0, %v2060_v1 }
 0x63b   :  { %1915 = vmatprep.subr.bf16.mxu0 %v2058_v0 }
 0x63e   :  { %1917 = vmatpush3.bf16.msra.mxu0 %v2238_v3 }
 0x63f   :  { %1924 = vmatprep.subr.bf16.mxu0 %v2058_v0 }
 0x6b2   :  { %v1510_v61 = vpop.permute.xlu0 %1509 }
 0x6b3   :  { %vm1512_vm7 = vcmp.eq.s32.totalorder %v1510_v61, 1 }
 0x704   :  { %v775_v5 = vpop.f32.mrb[8].mxu0 }
 0x705   :  { %v779_v6 = vadd.f32 %v775_v5, %v705_v4  ;;  %v1740_v7 = vpop.f32.mrb[9].mxu0 }
 0x707   :  { %v780_v8 = vmax.f32 %v779_v6, 0.0 }
 0x709   :  { %781 = vst.msk [vmem:[#allocation2 + $0xe] sm:$0x3] %vm241_vm3, %v780_v8 }
 0x70c   :  { %v951_v10 = vpop.f32.mrb[10].mxu0 }
 0x70d   :  { %v1762_v11 = vpop.f32.mrb[11].mxu0 }
 0x710   :  { %v783_v9 = vld [vmem:[#allocation2 + $0x8] sm:$0xff] }
 0x711   :  { %1750 = vmatmul.mubr.msk.f32.vlgmr.msra.gmra.mrb[8].mxu1 %vm158_vm2, %v783_v9 }
 0x712   :  { %1908 = vmatpush3.bf16.msra.mxu1 %v2235_v63  ;;  %1771 = vmatprep.mubr.msk.f32.mxu1 %vm2059_vm0, %v2060_v1 }
 0x713   :  { %1909 = vmatprep.subr.bf16.mxu1 %v2058_v0 }
 0x716   :  { %1911 = vmatpush3.bf16.msra.mxu1 %v2238_v3 }
 0x717   :  { %1918 = vmatprep.subr.bf16.mxu1 %v2058_v0 }
 0x7e4   :  { %v1751_v13 = vpop.f32.mrb[8].mxu1 }
 0x7e5   :  { %v874_v14 = vadd.f32 %v1751_v13, %v1546_v12  ;;  %v868_v15 = vpop.f32.mrb[9].mxu1 }
 0x7e6   :  { %v869_v16 = vadd.f32 %v1546_v12, %v868_v15 }
 0x7e7   :  { %878 = vst.msk [vmem:[#allocation2 + $0x8] sm:$0xff] %vm158_vm2, %v874_v14 }
 0x7e8   :  { %877 = vst.msk [vmem:[#allocation2] sm:$0xff] %vm158_vm2, %v869_v16 }
 0x7ee   :  { %v1189_v41 = vld [vmem:[#allocation2 + $0x8] sm:$0x3]  ;;  %v1266_v46 = vld [vmem:[#allocation2 + $0xa] sm:$0x3]  ;;  %v1420_v56 = vld [vmem:[#allocation2 + $0xe] sm:$0x3] }
 0x7ef   :  { %v884_v17 = vld [vmem:[#allocation2] sm:$0x3]  ;;  %v958_v20 = vld [vmem:[#allocation2 + $0x2] sm:$0x3]  ;;  %v1035_v28 = vld [vmem:[#allocation2 + $0x4] sm:$0x3] }
 0x7f0   :  { %v955_v18 = vadd.f32 %v951_v10, %v884_v17  ;;  %v1112_v33 = vld [vmem:[#allocation2 + $0x6] sm:$0x3] }
 0x7f2   :  { %v956_v19 = vmax.f32 %v955_v18, 0.0 }
 0x7f4   :  { %957 = vst.msk [vmem:[#allocation2] sm:$0x3] %vm241_vm3, %v956_v19  ;;  %1772 = vmatmul.mubr.msk.f32.vlgmr.msra.gmra.mrb[10].mxu1 %vm158_vm2, %v956_v19 }
 0x7f5   :  { %1920 = vmatpush3.bf16.msra.mxu1 %v2235_v63  ;;  %1793 = vmatprep.mubr.msk.f32.mxu1 %vm2059_vm0, %v2060_v1 }
 0x7f6   :  { %1921 = vmatprep.subr.bf16.mxu1 %v2058_v0 }
 0x7f9   :  { %1923 = vmatpush3.bf16.msra.mxu1 %v2238_v3 }
 0x7fa   :  { %1930 = vmatprep.subr.bf16.mxu1 %v2058_v0 }
 0x8c7   :  { %v1028_v21 = vpop.f32.mrb[10].mxu1 }
 0x8c8   :  { %v1032_v22 = vadd.f32 %v1028_v21, %v958_v20  ;;  %v1773_v23 = vpop.f32.mrb[11].mxu1 }
 0x8ca   :  { %v1033_v24 = vmax.f32 %v1032_v22, 0.0 }
 0x8cc   :  { %1034 = vst.msk [vmem:[#allocation2 + $0x2] sm:$0x3] %vm241_vm3, %v1033_v24  ;;  %1783 = vmatmul.mubr.msk.f32.vlgmr.msra.gmra.mrb[12].mxu0 %vm158_vm2, %v1033_v24 }
 0x8cd   :  { %1926 = vmatpush3.bf16.msra.mxu0 %v2235_v63  ;;  %1804 = vmatprep.mubr.msk.f32.mxu0 %vm2059_vm0, %v2060_v1 }
 0x8ce   :  { %1927 = vmatprep.subr.bf16.mxu0 %v2058_v0 }
 0x8d1   :  { %1929 = vmatpush3.bf16.msra.mxu0 %v2238_v3 }
 0x8d2   :  { %1936 = vmatprep.subr.bf16.mxu0 %v2058_v0 }
 0x99f   :  { %v1105_v29 = vpop.f32.mrb[12].mxu0 }
 0x9a0   :  { %v1109_v30 = vadd.f32 %v1105_v29, %v1035_v28  ;;  %v1784_v31 = vpop.f32.mrb[13].mxu0 }
 0x9a2   :  { %v1110_v32 = vmax.f32 %v1109_v30, 0.0 }
 0x9a4   :  { %1111 = vst.msk [vmem:[#allocation2 + $0x4] sm:$0x3] %vm241_vm3, %v1110_v32  ;;  %1794 = vmatmul.mubr.msk.f32.vlgmr.msra.gmra.mrb[12].mxu1 %vm158_vm2, %v1110_v32 }
 0x9a5   :  { %1932 = vmatpush3.bf16.msra.mxu1 %v2235_v63  ;;  %1815 = vmatprep.mubr.msk.f32.mxu1 %vm2059_vm0, %v2060_v1 }
 0x9a6   :  { %1933 = vmatprep.subr.bf16.mxu1 %v2058_v0 }
 0x9a9   :  { %1935 = vmatpush3.bf16.msra.mxu1 %v2238_v3 }
 0x9aa   :  { %1942 = vmatprep.subr.bf16.mxu1 %v2058_v0 }
 0xa77   :  { %v1182_v34 = vpop.f32.mrb[12].mxu1 }
 0xa78   :  { %v1186_v35 = vadd.f32 %v1182_v34, %v1112_v33  ;;  %v1795_v36 = vpop.f32.mrb[13].mxu1 }
 0xa7a   :  { %v1187_v37 = vmax.f32 %v1186_v35, 0.0 }
 0xa7c   :  { %1188 = vst.msk [vmem:[#allocation2 + $0x6] sm:$0x3] %vm241_vm3, %v1187_v37  ;;  %1805 = vmatmul.mubr.msk.f32.vlgmr.msra.gmra.mrb[14].mxu0 %vm158_vm2, %v1187_v37 }
 0xa7d   :  { %1938 = vmatpush3.bf16.msra.mxu0 %v2235_v63  ;;  %1826 = vmatprep.mubr.msk.f32.mxu0 %vm2059_vm0, %v2060_v1 }
 0xa7e   :  { %1939 = vmatprep.subr.bf16.mxu0 %v2058_v0 }
 0xa81   :  { %1941 = vmatpush3.bf16.msra.mxu0 %v2238_v3 }
 0xa83   :  { %v1501_v39 = vld [vmem:[#allocation2] sm:$0xff] }
 0xa84   :  { %v1513_v40 = vsel %vm1511_vm5, %v1501_v39, 0.0 }
 0xa85   :  { %1515 = vst.msk [vmem:[#allocation9] sm:$0xff] %vm158_vm2, %v1513_v40 }
 0xb4f   :  { %v1259_v42 = vpop.f32.mrb[14].mxu0 }
 0xb50   :  { %v1263_v43 = vadd.f32 %v1259_v42, %v1189_v41  ;;  %v1806_v44 = vpop.f32.mrb[15].mxu0 }
 0xb52   :  { %v1264_v45 = vmax.f32 %v1263_v43, 0.0 }
 0xb54   :  { %1265 = vst.msk [vmem:[#allocation2 + $0x8] sm:$0x3] %vm241_vm3, %v1264_v45  ;;  %1816 = vmatmul.mubr.msk.f32.vlgmr.msra.gmra.mrb[14].mxu1 %vm158_vm2, %v1264_v45 }
 0xb55   :  { %1944 = vmatpush3.bf16.msra.mxu1 %v2235_v63  ;;  %1837 = vmatprep.mubr.msk.f32.mxu1 %vm2059_vm0, %v2060_v1  ;;  %v1343_v1 = vld [vmem:[#allocation2 + $0xc] sm:$0x3] }
 0xb56   :  { %1945 = vmatprep.subr.bf16.mxu1 %v2058_v0 }
 0xb59   :  { %1947 = vmatpush3.bf16.msra.mxu1 %v2238_v3 }
 0xc27   :  { %v1336_v47 = vpop.f32.mrb[14].mxu1 }
 0xc28   :  { %v1340_v48 = vadd.f32 %v1336_v47, %v1266_v46  ;;  %v1817_v49 = vpop.f32.mrb[15].mxu1 }
 0xc2a   :  { %v1341_v50 = vmax.f32 %v1340_v48, 0.0 }
 0xc2c   :  { %1342 = vst.msk [vmem:[#allocation2 + $0xa] sm:$0x3] %vm241_vm3, %v1341_v50  ;;  %1827 = vmatmul.mubr.msk.f32.vlgmr.msra.gmra.mrb[16].mxu0 %vm158_vm2, %v1341_v50 }
 0xcff   :  { %v1413_v0 = vpop.f32.mrb[16].mxu0 }
 0xd00   :  { %v1417_v53 = vadd.f32 %v1413_v0, %v1343_v1  ;;  %v1828_v54 = vpop.f32.mrb[17].mxu0 }
 0xd02   :  { %v1418_v55 = vmax.f32 %v1417_v53, 0.0 }
 0xd04   :  { %1419 = vst.msk [vmem:[#allocation2 + $0xc] sm:$0x3] %vm241_vm3, %v1418_v55  ;;  %1838 = vmatmul.mubr.msk.f32.vlgmr.msra.gmra.mrb[16].mxu1 %vm158_vm2, %v1418_v55 }
 0xdd7   :  { %v1490_v57 = vpop.f32.mrb[16].mxu1 }
 0xdd8   :  { %v1494_v58 = vadd.f32 %v1490_v57, %v1420_v56  ;;  %v1839_v59 = vpop.f32.mrb[17].mxu1 }
 0xdda   :  { %v1495_v60 = vmax.f32 %v1494_v58, 0.0 }
 0xddc   :  { %1496 = vst.msk [vmem:[#allocation2 + $0xe] sm:$0x3] %vm241_vm3, %v1495_v60 }
 0xde3   :  { %v1502_v62 = vld [vmem:[#allocation2 + $0x8] sm:$0xff] }
 0xde4   :  { %v1514_v63 = vsel %vm1512_vm7, %v1502_v62, 0.0 }
 0xde5   :  { %1516 = vst.msk [vmem:[#allocation9 + $0x8] sm:$0xff] %vm158_vm2, %v1514_v63 }
 0xde6   :  { %2036 = shalt.err (!%p2033_p0)
}
 0xde7   :  { %s2037_s23 = scalar_lea.hbm %s2335_s6, 256 }
 0xde8   :  { %p2038_p1 = scmp.ne.s32.totalorder %s2335_s6, %s2037_s23  ;;  %p2041_p2 = scmp.lt.u32.totalorder %s2037_s23, %s2335_s6 }
 0xdea   :  { %p2043_p3 = pnand %p2041_p2, %p2038_p1 }
 0xdec   :  { %2046 = shalt.err (!%p2043_p3)
}
 0xded   :  { %1528 = dma.vmem_to_hbm [thread:$0]  %s1523_s20, 256, %s2335_s6, [#allocation5], %s2055_s9, %s2055_s9, %s2056_s10  }
 0xdee   :  { %2051 = dma.done.wait [#allocation5], 256  }
 0xdef   :  { %2052 = vsyncadd [#allocation5], 4294967040 }
 0xdf0   :  { %1532 = vsyncpa [#allocation4], 1 }
 0xdf1   :  { %1533 = vsyncpa [#allocation7], 1 }
 0xdf2   :  { %1534 = vsyncpa [#allocation5], 1 }

</bundles_post_ra>
